<compile_context>
chip_gen: v5e
topology: v5e:2x2
jax: 0.10.0
libtpu: 0.0.40
codegen_flags: <defaults>
</compile_context>

<pallas_src>
import functools
import math

import jax
import jax.numpy as jnp
import numpy as np
from jax.experimental import pallas as pl
from jax.experimental.pallas import tpu as pltpu

PI = 0.5
SIGMA_1 = math.exp(-0.0)   # = 1.0
SIGMA_2 = math.exp(-6.0)
LOG_SIGMA_1 = 0.0
LOG_SIGMA_2 = -6.0
LOG_SQRT_2PI = math.log(math.sqrt(2.0 * math.pi))


def _round_up(x, m):
    return ((x + m - 1) // m) * m


def _softplus(x):
    # Matches torch.log1p(torch.exp(rho)) in the reference module.
    return jnp.log1p(jnp.exp(x))


def _mixture_log_prob(w):
    # log(PI*N(w;0,s1) + (1-PI)*N(w;0,s2)) computed in log space:
    #   lp1 + log(PI + (1-PI)*exp(lp2-lp1))
    # One EUP exp per element (was two) and no log(0) = -inf for large |w|
    # (s1 > s2 so lp2 - lp1 is bounded above by 2*(log s1 - log s2) = 12).
    lp1 = -LOG_SQRT_2PI - LOG_SIGMA_1 - w * w * (0.5 / (SIGMA_1 * SIGMA_1))
    lp2 = -LOG_SQRT_2PI - LOG_SIGMA_2 - w * w * (0.5 / (SIGMA_2 * SIGMA_2))
    return lp1 + jnp.log(PI + (1.0 - PI) * jnp.exp(lp2 - lp1))


def _posterior_log_prob(w, mu, sigma):
    return -LOG_SQRT_2PI - jnp.log(sigma) - (w - mu) ** 2 / (2.0 * sigma ** 2)


# ---------------------------------------------------------------------------
# Kernel A: reparameterized sample -> packed weight + scalar log-prob reductions
# ---------------------------------------------------------------------------
def sample_pack_logprob_kernel(w_mu_ref, w_rho_ref, w_eps_ref,
                               b_mu_ref, b_rho_ref, b_eps_ref,
                               w_ext_ref, logprior_ref, logvarpost_ref, *, kkc):
    w_sigma = _softplus(w_rho_ref[...])
    b_sigma = _softplus(b_rho_ref[...])
    w = w_mu_ref[...] + w_sigma * w_eps_ref[...]          # (oc_tile, kkc)
    b = b_mu_ref[...] + b_sigma * b_eps_ref[...]          # (oc_tile, 1)

    # Packed output consumed directly by the conv kernel: weights in [:, :kkc],
    # sampled bias in column kkc.  No wrapper-side repack / scatter needed.
    w_ext_ref[:, :kkc] = w
    w_ext_ref[:, kkc:kkc + 1] = b

    lp = (jnp.sum(_mixture_log_prob(w), keepdims=True)
          + jnp.sum(_mixture_log_prob(b), keepdims=True))
    lvp = (jnp.sum(_posterior_log_prob(w, w_mu_ref[...], w_sigma), keepdims=True)
           + jnp.sum(_posterior_log_prob(b, b_mu_ref[...], b_sigma), keepdims=True))

    # Resident (1,1) accumulators across the OC-tile grid (init at step 0).
    @pl.when(pl.program_id(0) == 0)
    def _init():
        logprior_ref[...] = jnp.zeros_like(logprior_ref)
        logvarpost_ref[...] = jnp.zeros_like(logvarpost_ref)

    logprior_ref[...] += lp
    logvarpost_ref[...] += lvp


# ---------------------------------------------------------------------------
# Kernel B: fused im2col + conv as one MXU matmul per image
# ---------------------------------------------------------------------------
def fused_conv_kernel(w_ext_ref, x_ref, out_ref, *, kk, width, hw, kkc):
    # x_ref   : (C, HWP)     one image, pixels flattened as h*width + w, zero halo pad
    # w_ext_ref: (OC, kkc+1)  columns ordered (kh*K + kw)*C + c, bias in column kkc
    # out_ref : (OC, hw)      out[:, h*width + w] (cropped to (OH, OW) by the wrapper)
    x = x_ref[...]
    w_ext = w_ext_ref[...]
    wmat = w_ext[:, :kkc]                 # (OC, kkc)
    bias = w_ext[:, kkc:kkc + 1]          # (OC, 1)

    # Build the shifted-row stack in VMEM: S[(kh*K+kw)*C + c, p] = x[c, p + kh*W + kw].
    # Pure on-chip slices/shuffles -> no K^2-inflated im2col matrix ever hits HBM.
    rows = []
    for kh in range(kk):
        for kw in range(kk):
            d = kh * width + kw
            rows.append(x[:, d:d + hw])                       # (C, hw), static shift
    s = jnp.concatenate(rows, axis=0)                         # (kkc, hw)

    acc = jnp.dot(wmat, s, preferred_element_type=jnp.float32)   # (OC, hw) on the MXU
    out_ref[...] = (acc + bias).astype(out_ref.dtype)


# ---------------------------------------------------------------------------
# Wrapper
# ---------------------------------------------------------------------------
def bayesian_conv_forward(x, w_mu, w_rho, b_mu, b_rho, w_eps, b_eps, *,
                          use_bf16_mxu=False):
    """Returns (output NCHW, log_prior scalar, log_variational_posterior scalar)."""
    OC, C, K, K2 = w_mu.shape
    assert K == K2
    N, Cin, H, W = x.shape
    assert Cin == C
    OH, OW = H - K + 1, W - K + 1
    KKC = K * K * C
    HW = H * W
    # Max static shift used by the fused im2col; pad the lane dim once (cheap, on x).
    HWP = _round_up(HW + (K - 1) * W + (K - 1), 128)

    # Reorder the tiny parameter tensors once so flattened column (kh*K+kw)*C + c
    # matches the shifted-row order built inside the conv kernel.
    def _reorder(p):
        return jnp.transpose(p, (0, 2, 3, 1)).reshape(OC, KKC).astype(jnp.float32)

    w_mu_r, w_rho_r, w_eps_r = _reorder(w_mu), _reorder(w_rho), _reorder(w_eps)
    b_mu_r = b_mu.reshape(OC, 1).astype(jnp.float32)
    b_rho_r = b_rho.reshape(OC, 1).astype(jnp.float32)
    b_eps_r = b_eps.reshape(OC, 1).astype(jnp.float32)

    # OC tile for Kernel A: bounds the per-step f32 temporaries for large layers
    # (sigma, w, posterior terms, ...) instead of one whole-array block.
    oc_tile = OC
    for t in (512, 256, 128, 64, 32, 16, 8):
        if OC % t == 0:
            oc_tile = t
            break

    w_ext, log_prior, log_var_post = pl.pallas_call(
        functools.partial(sample_pack_logprob_kernel, kkc=KKC),
        grid=(OC // oc_tile,),
        in_specs=[pl.BlockSpec((oc_tile, KKC), lambda i: (i, 0)),
                  pl.BlockSpec((oc_tile, KKC), lambda i: (i, 0)),
                  pl.BlockSpec((oc_tile, KKC), lambda i: (i, 0)),
                  pl.BlockSpec((oc_tile, 1), lambda i: (i, 0)),
                  pl.BlockSpec((oc_tile, 1), lambda i: (i, 0)),
                  pl.BlockSpec((oc_tile, 1), lambda i: (i, 0))],
        out_specs=(pl.BlockSpec((oc_tile, KKC + 1), lambda i: (i, 0)),
                   pl.BlockSpec((1, 1), lambda i: (0, 0)),
                   pl.BlockSpec((1, 1), lambda i: (0, 0))),
        out_shape=(jax.ShapeDtypeStruct((OC, KKC + 1), jnp.float32),
                   jax.ShapeDtypeStruct((1, 1), jnp.float32),
                   jax.ShapeDtypeStruct((1, 1), jnp.float32)),
        compiler_params=pltpu.CompilerParams(
            dimension_semantics=("arbitrary",)),   # scalar accumulation across OC tiles
    )(w_mu_r, w_rho_r, w_eps_r, b_mu_r, b_rho_r, b_eps_r)

    # x: (N, C, H, W) -> (N, C, H*W) (trailing-dim merge) + zero halo pad on lanes.
    # x is read from HBM exactly once per image by the conv grid (no K^2 inflation).
    xf = jnp.pad(x.reshape(N, C, HW).astype(jnp.float32),
                 ((0, 0), (0, 0), (0, HWP - HW)))

    if use_bf16_mxu:
        # v6e/v7x: halves HBM traffic of the image operand on the bf16-native MXU;
        # accumulation stays f32 via preferred_element_type.
        xf = xf.astype(jnp.bfloat16)
        w_ext = w_ext.astype(jnp.bfloat16)

    out_full = pl.pallas_call(
        functools.partial(fused_conv_kernel, kk=K, width=W, hw=HW, kkc=KKC),
        grid=(N,),
        in_specs=[pl.BlockSpec((OC, KKC + 1), lambda n: (0, 0)),   # packed W + bias
                  pl.BlockSpec((None, C, HWP), lambda n: (n, 0, 0))],  # one image
        out_specs=pl.BlockSpec((None, OC, HW), lambda n: (n, 0, 0)),   # lane-dense
        out_shape=jax.ShapeDtypeStruct((N, OC, HW), jnp.float32),
        compiler_params=pltpu.CompilerParams(
            dimension_semantics=("parallel",),     # images are independent
            # Per-step footprint (x slab + S + out) is far below the scoped default on
            # v5e/v6e/v7x at these sizes; re-derive (raise on v5e/v6e, cap for v7x's
            # 64 MiB VMEM) if C*K*K*H*W grows into the multi-MiB range.
            vmem_limit_bytes=32 * 1024 * 1024),
    )(w_ext, xf)

    # Columns already in n, oc, (oh*W + ow) order: reshape + crop, no transpose.
    out = out_full.reshape(N, OC, H, W)[:, :, :OH, :OW]
    return out, log_prior[0, 0], log_var_post[0, 0]


# ---------------------------------------------------------------------------
# Main: deterministic params, run kernels, check against pure-JAX reference.
# ---------------------------------------------------------------------------
if __name__ == "__main__":
    key = jax.random.PRNGKey(0)
    k1, k2, k3, k4, k5, k6, kx = jax.random.split(key, 7)

    in_channels, out_channels, kernel_size = 4, 8, 5
    N, H, W = 2, 16, 16

    wshape = (out_channels, in_channels, kernel_size, kernel_size)
    w_mu = jax.random.uniform(k1, wshape, jnp.float32, -0.2, 0.2)
    w_rho = jax.random.uniform(k2, wshape, jnp.float32, -5.0, -4.0)
    b_mu = jax.random.uniform(k3, (out_channels,), jnp.float32, -0.2, 0.2)
    b_rho = jax.random.uniform(k4, (out_channels,), jnp.float32, -5.0, -4.0)

    # "training / sample=True" path: epsilon drawn deterministically here
    # (torch.distributions.Normal sampling replaced by jax.random).
    w_eps = jax.random.normal(k5, wshape, jnp.float32)
    b_eps = jax.random.normal(k6, (out_channels,), jnp.float32)

    x = jax.random.normal(kx, (N, in_channels, H, W), jnp.float32)

    out, log_prior, log_var_post = bayesian_conv_forward(
        x, w_mu, w_rho, b_mu, b_rho, w_eps, b_eps)
    jax.block_until_ready(out)

    # ------------------ pure-JAX reference (mirrors the torch module) --------
    sigma_w = jnp.log1p(jnp.exp(w_rho))
    sigma_b = jnp.log1p(jnp.exp(b_rho))
    w = w_mu + sigma_w * w_eps
    b = b_mu + sigma_b * b_eps
    ref_out = jax.lax.conv_general_dilated(
        x, w, window_strides=(1, 1), padding="VALID",
        dimension_numbers=("NCHW", "OIHW", "NCHW")) + b[None, :, None, None]

    def ref_mixture_lp(v):
        p1 = jnp.exp(-LOG_SQRT_2PI - math.log(SIGMA_1) - v ** 2 / (2 * SIGMA_1 ** 2))
        p2 = jnp.exp(-LOG_SQRT_2PI - math.log(SIGMA_2) - v ** 2 / (2 * SIGMA_2 ** 2))
        return jnp.sum(jnp.log(PI * p1 + (1 - PI) * p2))

    def ref_posterior_lp(v, mu, sigma):
        return jnp.sum(-LOG_SQRT_2PI - jnp.log(sigma) - (v - mu) ** 2 / (2 * sigma ** 2))

    ref_lp = ref_mixture_lp(w) + ref_mixture_lp(b)
    ref_lvp = ref_posterior_lp(w, w_mu, sigma_w) + ref_posterior_lp(b, b_mu, sigma_b)

    np.testing.assert_allclose(np.asarray(out), np.asarray(ref_out),
                               rtol=1e-4, atol=1e-4)
    np.testing.assert_allclose(float(log_prior), float(ref_lp), rtol=1e-4, atol=1e-3)
    np.testing.assert_allclose(float(log_var_post), float(ref_lvp), rtol=1e-4, atol=1e-3)

    print("KERNEL_OK")
</pallas_src>

<mosaic_0001>
module attributes {stable_mosaic.version = 11 : i64} {
  func.func @sample_pack_logprob_kernel(%arg0: i32, %arg1: memref<8x100xf32, #tpu.memory_space<vmem>>, %arg2: memref<8x100xf32, #tpu.memory_space<vmem>>, %arg3: memref<8x100xf32, #tpu.memory_space<vmem>>, %arg4: memref<8x1xf32, #tpu.memory_space<vmem>>, %arg5: memref<8x1xf32, #tpu.memory_space<vmem>>, %arg6: memref<8x1xf32, #tpu.memory_space<vmem>>, %arg7: memref<8x101xf32, #tpu.memory_space<vmem>>, %arg8: memref<1x1xf32, #tpu.memory_space<vmem>>, %arg9: memref<1x1xf32, #tpu.memory_space<vmem>>) attributes {dimension_semantics = [#tpu.dimension_semantics<arbitrary>], iteration_bounds = array<i64: 1>, scalar_prefetch = 0 : i64, scratch_operands = 0 : i64, tpu.core_type = #tpu.core_type<tc>, window_params = [{transform_indices = @transform_0, window_bounds = array<i64: 8, 100>}, {transform_indices = @transform_1, window_bounds = array<i64: 8, 100>}, {transform_indices = @transform_2, window_bounds = array<i64: 8, 100>}, {transform_indices = @transform_3, window_bounds = array<i64: 8, 1>}, {transform_indices = @transform_4, window_bounds = array<i64: 8, 1>}, {transform_indices = @transform_5, window_bounds = array<i64: 8, 1>}, {transform_indices = @transform_6, window_bounds = array<i64: 8, 101>}, {pipeline_mode = #tpu.pipeline_mode<synchronous>, transform_indices = @transform_7, window_bounds = array<i64: 1, 1>}, {pipeline_mode = #tpu.pipeline_mode<synchronous>, transform_indices = @transform_8, window_bounds = array<i64: 1, 1>}]} {
    %c0 = arith.constant 0 : index
    %c0_0 = arith.constant 0 : index
    %0 = vector.load %arg2[%c0, %c0_0] : memref<8x100xf32, #tpu.memory_space<vmem>>, vector<8x100xf32>
    %1 = math.exp %0 : vector<8x100xf32>
    %2 = math.log1p %1 : vector<8x100xf32>
    %c0_1 = arith.constant 0 : index
    %c0_2 = arith.constant 0 : index
    %3 = vector.load %arg5[%c0_1, %c0_2] : memref<8x1xf32, #tpu.memory_space<vmem>>, vector<8x1xf32>
    %4 = math.exp %3 : vector<8x1xf32>
    %5 = math.log1p %4 : vector<8x1xf32>
    %c0_3 = arith.constant 0 : index
    %c0_4 = arith.constant 0 : index
    %6 = vector.load %arg1[%c0_3, %c0_4] : memref<8x100xf32, #tpu.memory_space<vmem>>, vector<8x100xf32>
    %c0_5 = arith.constant 0 : index
    %c0_6 = arith.constant 0 : index
    %7 = vector.load %arg3[%c0_5, %c0_6] : memref<8x100xf32, #tpu.memory_space<vmem>>, vector<8x100xf32>
    %8 = arith.mulf %2, %7 : vector<8x100xf32>
    %9 = arith.addf %6, %8 : vector<8x100xf32>
    %c0_7 = arith.constant 0 : index
    %c0_8 = arith.constant 0 : index
    %10 = vector.load %arg4[%c0_7, %c0_8] : memref<8x1xf32, #tpu.memory_space<vmem>>, vector<8x1xf32>
    %c0_9 = arith.constant 0 : index
    %c0_10 = arith.constant 0 : index
    %11 = vector.load %arg6[%c0_9, %c0_10] : memref<8x1xf32, #tpu.memory_space<vmem>>, vector<8x1xf32>
    %12 = arith.mulf %5, %11 : vector<8x1xf32>
    %13 = arith.addf %10, %12 : vector<8x1xf32>
    %c0_11 = arith.constant 0 : index
    %c0_12 = arith.constant 0 : index
    %14 = vector.load %arg7[%c0_11, %c0_12] : memref<8x101xf32, #tpu.memory_space<vmem>>, vector<8x100xf32>
    tpu.vector_store %arg7[%c0_11, %c0_12], %9 {strides = array<i32>} : memref<8x101xf32, #tpu.memory_space<vmem>>, vector<8x100xf32>,
    %c0_13 = arith.constant 0 : index
    %c100 = arith.constant 100 : index
    %15 = vector.load %arg7[%c0_13, %c100] : memref<8x101xf32, #tpu.memory_space<vmem>>, vector<8x1xf32>
    tpu.vector_store %arg7[%c0_13, %c100], %13 {strides = array<i32>} : memref<8x101xf32, #tpu.memory_space<vmem>>, vector<8x1xf32>,
    %16 = arith.mulf %9, %9 : vector<8x100xf32>
    %cst = arith.constant 5.000000e-01 : f32
    %17 = vector.broadcast %cst : f32 to vector<8x100xf32>
    %18 = arith.mulf %16, %17 : vector<8x100xf32>
    %cst_14 = arith.constant -0.918938517 : f32
    %19 = vector.broadcast %cst_14 : f32 to vector<8x100xf32>
    %20 = arith.subf %19, %18 : vector<8x100xf32>
    %21 = arith.mulf %9, %9 : vector<8x100xf32>
    %cst_15 = arith.constant 81377.3984 : f32
    %22 = vector.broadcast %cst_15 : f32 to vector<8x100xf32>
    %23 = arith.mulf %21, %22 : vector<8x100xf32>
    %cst_16 = arith.constant 5.08106136 : f32
    %24 = vector.broadcast %cst_16 : f32 to vector<8x100xf32>
    %25 = arith.subf %24, %23 : vector<8x100xf32>
    %26 = arith.subf %25, %20 : vector<8x100xf32>
    %27 = math.exp %26 : vector<8x100xf32>
    %cst_17 = arith.constant 5.000000e-01 : f32
    %28 = vector.broadcast %cst_17 : f32 to vector<8x100xf32>
    %29 = arith.mulf %28, %27 : vector<8x100xf32>
    %cst_18 = arith.constant 5.000000e-01 : f32
    %30 = vector.broadcast %cst_18 : f32 to vector<8x100xf32>
    %31 = arith.addf %30, %29 : vector<8x100xf32>
    %32 = math.log %31 : vector<8x100xf32>
    %33 = arith.addf %20, %32 : vector<8x100xf32>
    %34 = vector.shape_cast %33 : vector<8x100xf32> to vector<1x8x100xf32>
    %cst_19 = arith.constant dense<0.000000e+00> : vector<1xf32>
    %35 = vector.multi_reduction <add>, %34, %cst_19 [1, 2] : vector<1x8x100xf32> to vector<1xf32>
    %36 = vector.shape_cast %35 : vector<1xf32> to vector<1x1x1xf32>
    %37 = vector.extract %36[0, 0, 0] : f32 from vector<1x1x1xf32>
    %38 = vector.broadcast %37 : f32 to vector<1x1xf32>
    %39 = arith.mulf %13, %13 : vector<8x1xf32>
    %cst_20 = arith.constant 5.000000e-01 : f32
    %40 = vector.broadcast %cst_20 : f32 to vector<8x1xf32>
    %41 = arith.mulf %39, %40 : vector<8x1xf32>
    %cst_21 = arith.constant -0.918938517 : f32
    %42 = vector.broadcast %cst_21 : f32 to vector<8x1xf32>
    %43 = arith.subf %42, %41 : vector<8x1xf32>
    %44 = arith.mulf %13, %13 : vector<8x1xf32>
    %cst_22 = arith.constant 81377.3984 : f32
    %45 = vector.broadcast %cst_22 : f32 to vector<8x1xf32>
    %46 = arith.mulf %44, %45 : vector<8x1xf32>
    %cst_23 = arith.constant 5.08106136 : f32
    %47 = vector.broadcast %cst_23 : f32 to vector<8x1xf32>
    %48 = arith.subf %47, %46 : vector<8x1xf32>
    %49 = arith.subf %48, %43 : vector<8x1xf32>
    %50 = math.exp %49 : vector<8x1xf32>
    %cst_24 = arith.constant 5.000000e-01 : f32
    %51 = vector.broadcast %cst_24 : f32 to vector<8x1xf32>
    %52 = arith.mulf %51, %50 : vector<8x1xf32>
    %cst_25 = arith.constant 5.000000e-01 : f32
    %53 = vector.broadcast %cst_25 : f32 to vector<8x1xf32>
    %54 = arith.addf %53, %52 : vector<8x1xf32>
    %55 = math.log %54 : vector<8x1xf32>
    %56 = arith.addf %43, %55 : vector<8x1xf32>
    %57 = vector.shape_cast %56 : vector<8x1xf32> to vector<1x8x1xf32>
    %cst_26 = arith.constant dense<0.000000e+00> : vector<1xf32>
    %58 = vector.multi_reduction <add>, %57, %cst_26 [1, 2] : vector<1x8x1xf32> to vector<1xf32>
    %59 = vector.shape_cast %58 : vector<1xf32> to vector<1x1x1xf32>
    %60 = vector.extract %59[0, 0, 0] : f32 from vector<1x1x1xf32>
    %61 = vector.broadcast %60 : f32 to vector<1x1xf32>
    %62 = arith.addf %38, %61 : vector<1x1xf32>
    %c0_27 = arith.constant 0 : index
    %c0_28 = arith.constant 0 : index
    %63 = vector.load %arg1[%c0_27, %c0_28] : memref<8x100xf32, #tpu.memory_space<vmem>>, vector<8x100xf32>
    %64 = math.log %2 : vector<8x100xf32>
    %cst_29 = arith.constant -0.918938517 : f32
    %65 = vector.broadcast %cst_29 : f32 to vector<8x100xf32>
    %66 = arith.subf %65, %64 : vector<8x100xf32>
    %67 = arith.subf %9, %63 : vector<8x100xf32>
    %68 = arith.mulf %67, %67 : vector<8x100xf32>
    %69 = arith.mulf %2, %2 : vector<8x100xf32>
    %cst_30 = arith.constant 2.000000e+00 : f32
    %70 = vector.broadcast %cst_30 : f32 to vector<8x100xf32>
    %71 = arith.mulf %70, %69 : vector<8x100xf32>
    %72 = arith.divf %68, %71 : vector<8x100xf32>
    %73 = arith.subf %66, %72 : vector<8x100xf32>
    %74 = vector.shape_cast %73 : vector<8x100xf32> to vector<1x8x100xf32>
    %cst_31 = arith.constant dense<0.000000e+00> : vector<1xf32>
    %75 = vector.multi_reduction <add>, %74, %cst_31 [1, 2] : vector<1x8x100xf32> to vector<1xf32>
    %76 = vector.shape_cast %75 : vector<1xf32> to vector<1x1x1xf32>
    %77 = vector.extract %76[0, 0, 0] : f32 from vector<1x1x1xf32>
    %78 = vector.broadcast %77 : f32 to vector<1x1xf32>
    %c0_32 = arith.constant 0 : index
    %c0_33 = arith.constant 0 : index
    %79 = vector.load %arg4[%c0_32, %c0_33] : memref<8x1xf32, #tpu.memory_space<vmem>>, vector<8x1xf32>
    %80 = math.log %5 : vector<8x1xf32>
    %cst_34 = arith.constant -0.918938517 : f32
    %81 = vector.broadcast %cst_34 : f32 to vector<8x1xf32>
    %82 = arith.subf %81, %80 : vector<8x1xf32>
    %83 = arith.subf %13, %79 : vector<8x1xf32>
    %84 = arith.mulf %83, %83 : vector<8x1xf32>
    %85 = arith.mulf %5, %5 : vector<8x1xf32>
    %cst_35 = arith.constant 2.000000e+00 : f32
    %86 = vector.broadcast %cst_35 : f32 to vector<8x1xf32>
    %87 = arith.mulf %86, %85 : vector<8x1xf32>
    %88 = arith.divf %84, %87 : vector<8x1xf32>
    %89 = arith.subf %82, %88 : vector<8x1xf32>
    %90 = vector.shape_cast %89 : vector<8x1xf32> to vector<1x8x1xf32>
    %cst_36 = arith.constant dense<0.000000e+00> : vector<1xf32>
    %91 = vector.multi_reduction <add>, %90, %cst_36 [1, 2] : vector<1x8x1xf32> to vector<1xf32>
    %92 = vector.shape_cast %91 : vector<1xf32> to vector<1x1x1xf32>
    %93 = vector.extract %92[0, 0, 0] : f32 from vector<1x1x1xf32>
    %94 = vector.broadcast %93 : f32 to vector<1x1xf32>
    %95 = arith.addf %78, %94 : vector<1x1xf32>
    %c0_i32 = arith.constant 0 : i32
    %96 = arith.cmpi eq, %arg0, %c0_i32 : i32
    %97 = arith.extui %96 : i1 to i32
    %c0_i32_37 = arith.constant 0 : i32
    %98 = arith.cmpi ne, %97, %c0_i32_37 : i32
    scf.if %98 {
      %cst_46 = arith.constant 0.000000e+00 : f32
      %105 = vector.broadcast %cst_46 : f32 to vector<1x1xf32>
      %c0_47 = arith.constant 0 : index
      %c0_48 = arith.constant 0 : index
      %106 = vector.load %arg8[%c0_47, %c0_48] : memref<1x1xf32, #tpu.memory_space<vmem>>, vector<1x1xf32>
      tpu.vector_store %arg8[%c0_47, %c0_48], %105 {strides = array<i32>} : memref<1x1xf32, #tpu.memory_space<vmem>>, vector<1x1xf32>,
      %cst_49 = arith.constant 0.000000e+00 : f32
      %107 = vector.broadcast %cst_49 : f32 to vector<1x1xf32>
      %c0_50 = arith.constant 0 : index
      %c0_51 = arith.constant 0 : index
      %108 = vector.load %arg9[%c0_50, %c0_51] : memref<1x1xf32, #tpu.memory_space<vmem>>, vector<1x1xf32>
      tpu.vector_store %arg9[%c0_50, %c0_51], %107 {strides = array<i32>} : memref<1x1xf32, #tpu.memory_space<vmem>>, vector<1x1xf32>,
    } else {
    }
    %c0_38 = arith.constant 0 : index
    %c0_39 = arith.constant 0 : index
    %99 = vector.load %arg8[%c0_38, %c0_39] : memref<1x1xf32, #tpu.memory_space<vmem>>, vector<1x1xf32>
    %100 = arith.addf %99, %62 : vector<1x1xf32>
    %c0_40 = arith.constant 0 : index
    %c0_41 = arith.constant 0 : index
    %101 = vector.load %arg8[%c0_40, %c0_41] : memref<1x1xf32, #tpu.memory_space<vmem>>, vector<1x1xf32>
    tpu.vector_store %arg8[%c0_40, %c0_41], %100 {strides = array<i32>} : memref<1x1xf32, #tpu.memory_space<vmem>>, vector<1x1xf32>,
    %c0_42 = arith.constant 0 : index
    %c0_43 = arith.constant 0 : index
    %102 = vector.load %arg9[%c0_42, %c0_43] : memref<1x1xf32, #tpu.memory_space<vmem>>, vector<1x1xf32>
    %103 = arith.addf %102, %95 : vector<1x1xf32>
    %c0_44 = arith.constant 0 : index
    %c0_45 = arith.constant 0 : index
    %104 = vector.load %arg9[%c0_44, %c0_45] : memref<1x1xf32, #tpu.memory_space<vmem>>, vector<1x1xf32>
    tpu.vector_store %arg9[%c0_44, %c0_45], %103 {strides = array<i32>} : memref<1x1xf32, #tpu.memory_space<vmem>>, vector<1x1xf32>,
    return
  }
  func.func @transform_0(%arg0: i32) -> (i32, i32) {
    %c0_i32 = arith.constant 0 : i32
    %c0_i32_0 = arith.constant 0 : i32
    return %arg0, %c0_i32 : i32, i32
  }
  func.func @transform_1(%arg0: i32) -> (i32, i32) {
    %c0_i32 = arith.constant 0 : i32
    %c0_i32_0 = arith.constant 0 : i32
    return %arg0, %c0_i32 : i32, i32
  }
  func.func @transform_2(%arg0: i32) -> (i32, i32) {
    %c0_i32 = arith.constant 0 : i32
    %c0_i32_0 = arith.constant 0 : i32
    return %arg0, %c0_i32 : i32, i32
  }
  func.func @transform_3(%arg0: i32) -> (i32, i32) {
    %c0_i32 = arith.constant 0 : i32
    %c0_i32_0 = arith.constant 0 : i32
    return %arg0, %c0_i32 : i32, i32
  }
  func.func @transform_4(%arg0: i32) -> (i32, i32) {
    %c0_i32 = arith.constant 0 : i32
    %c0_i32_0 = arith.constant 0 : i32
    return %arg0, %c0_i32 : i32, i32
  }
  func.func @transform_5(%arg0: i32) -> (i32, i32) {
    %c0_i32 = arith.constant 0 : i32
    %c0_i32_0 = arith.constant 0 : i32
    return %arg0, %c0_i32 : i32, i32
  }
  func.func @transform_6(%arg0: i32) -> (i32, i32) {
    %c0_i32 = arith.constant 0 : i32
    %c0_i32_0 = arith.constant 0 : i32
    return %arg0, %c0_i32 : i32, i32
  }
  func.func @transform_7(%arg0: i32) -> (i32, i32) {
    %c0_i32 = arith.constant 0 : i32
    %c0_i32_0 = arith.constant 0 : i32
    %c0_i32_1 = arith.constant 0 : i32
    return %c0_i32, %c0_i32_0 : i32, i32
  }
  func.func @transform_8(%arg0: i32) -> (i32, i32) {
    %c0_i32 = arith.constant 0 : i32
    %c0_i32_0 = arith.constant 0 : i32
    %c0_i32_1 = arith.constant 0 : i32
    return %c0_i32, %c0_i32_0 : i32, i32
  }
}

</mosaic_0001>

<bundles_post_ra>
// kernel: tpu_custom_call.1
= control target key start
LH: loop header
LB: loop body
LE: loop exit
PB: predicated region body
PF: predicated region fallthrough
CT: control target
= control target key end

     0   :  { %14 = vsyncpa [#allocation3], 0  ;;  %s466_s0 = inlined_call_operand.vmem [shape: f32[8,100], index: 0, kind: input, shape index: {}]   ;;  %s467_s1 = inlined_call_operand.vmem [shape: f32[8,100], index: 1, kind: input, shape index: {}]   ;;  %s468_s2 = inlined_call_operand.vmem [shape: f32[8,100], index: 2, kind: input, shape index: {}]   ;;  %s469_s3 = inlined_call_operand.vmem [shape: f32[8,1], index: 3, kind: input, shape index: {}]   ;;  %s470_s4 = inlined_call_operand.vmem [shape: f32[8,1], index: 4, kind: input, shape index: {}]   ;;  %s471_s5 = inlined_call_operand.vmem [shape: f32[8,1], index: 5, kind: input, shape index: {}]   ;;  %s472_s6 = inlined_call_operand.hbm [shape: f32[8,101], index: 6, kind: output, shape index: {0}]   ;;  %s473_s7 = inlined_call_operand.hbm [shape: f32[1,1], index: 7, kind: output, shape index: {1}]   ;;  %s474_s8 = inlined_call_operand.hbm [shape: f32[1,1], index: 8, kind: output, shape index: {2}]  }
   0x1   :  { %v28_v0 = vld [vmem:[%s467_s1] sm:$0xff] }
   0x2   :  { %v29_v1 = vmul.f32 1.442695, %v28_v0  ;;  %v40_v2 = vld [vmem:[%s470_s4] sm:$0xff] }
   0x3   :  { %v41_v3 = vmul.f32 1.442695, %v40_v2 }
   0x4   :  { %15 = vsyncpa [#allocation5], 0  ;;  %263 = vpow2.f32 %v29_v1  ;;  %v53_v19 = vld [vmem:[%s468_s2] sm:$0xff]  ;;  %vm60_vm2 = vcmask 818176   ;;  %vm105_vm11 = vcmask 7168   ;;  %vm193_vm12 = vcmask 0  }
   0x5   :  { %265 = vpow2.f32 %v41_v3  ;;  %v57_v21 = vld [vmem:[%s471_s5] sm:$0xff]  ;;  %s365_s2 = smov [#allocation2]   ;;  %s210_s16 = sshll.u32 %s472_s6, 4  ;;  %vm66_vm13 = vcmask 827168   ;;  %s211_s16 = int_to_ptr.hbm [resolvable:$true] %s210_s16 }
   0x6   :  { %v52_v23 = vld [vmem:[%s466_s0] sm:$0xff]  ;;  %s363_s0 = smov 100   ;;  %s366_s18 = smov [#allocation4]  }
   0x7   :  { %v56_v27 = vld [vmem:[%s469_s3] sm:$0xff]  ;;  %s208_s3 = sshll.u32 %s365_s2, 4  ;;  %s219_s19 = sshll.u32 %s366_s18, 4  ;;  %s209_s3 = int_to_ptr.vmem [resolvable:$true] %s208_s3  ;;  %s220_s19 = int_to_ptr.vmem [resolvable:$true] %s219_s19 }
   0x8   :  { %s221_s24 = sshll.u32 %s473_s7, 4  ;;  %s367_s25 = smov [#allocation6]   ;;  %s222_s24 = int_to_ptr.hbm [resolvable:$true] %s221_s24 }
   0x9   :  { %s230_s26 = sshll.u32 %s367_s25, 4  ;;  %s232_s29 = sshll.u32 %s474_s8, 4  ;;  %s231_s26 = int_to_ptr.vmem [resolvable:$true] %s230_s26  ;;  %s233_s29 = int_to_ptr.hbm [resolvable:$true] %s232_s29 }
   0xa   :  { %v264_v4 = vpop.eup %263 }
   0xb   :  { %v266_v5 = vpop.eup %265  ;;  %v31_v6 = vadd.f32 1.0, %v264_v4  ;;  %v34_v7 = vmul.f32 -0.5, %v264_v4  ;;  %v37_v11 = vand.u32 2147483647, %v264_v4 }
   0xc   :  { %v43_v8 = vadd.f32 1.0, %v266_v5  ;;  %v46_v9 = vmul.f32 -0.5, %v266_v5  ;;  %v49_v13 = vand.u32 2147483647, %v266_v5 }
   0xd   :  { %267 = vlog2.f32 %v31_v6  ;;  %v35_v10 = vadd.f32 1.0, %v34_v7  ;;  %vm38_vm0 = vcmp.lt.f32.partialorder %v37_v11, 0.0004427343 }
   0xe   :  { %269 = vlog2.f32 %v43_v8  ;;  %v47_v12 = vadd.f32 1.0, %v46_v9  ;;  %vm50_vm1 = vcmp.lt.f32.partialorder %v49_v13, 0.0004427343 }
   0xf   :  { %v36_v14 = vmul.f32 %v264_v4, %v35_v10 }
  0x10   :  { %v48_v16 = vmul.f32 %v266_v5, %v47_v12 }
  0x13   :  { %v268_v15 = vpop.eup %267 }
  0x14   :  { %v270_v17 = vpop.eup %269  ;;  %v33_v18 = vmul.f32 0.6931472, %v268_v15 }
  0x15   :  { %v45_v20 = vmul.f32 0.6931472, %v270_v17 }
  0x16   :  { %v39_v22 = vsel %vm38_vm0, %v36_v14, %v33_v18 }
  0x17   :  { %v54_v24 = vmul.f32 %v53_v19, %v39_v22  ;;  %v124_v25 = vmul.f32 %v39_v22, %v39_v22  ;;  %v51_v26 = vsel %vm50_vm1, %v48_v16, %v45_v20 }
  0x18   :  { %v58_v28 = vmul.f32 %v57_v21, %v51_v26  ;;  %v159_v29 = vmul.f32 %v51_v26, %v51_v26 }
  0x19   :  { %v55_v30 = vadd.f32 %v54_v24, %v52_v23  ;;  %v125_v31 = vmul.f32 2.0, %v124_v25 }
  0x1a   :  { %v59_v32 = vadd.f32 %v58_v28, %v56_v27  ;;  %v160_v33 = vmul.f32 2.0, %v159_v29 }
  0x1b   :  { %271 = vrcp.f32 %v125_v31  ;;  %61 = vst.msk [vmem:[#allocation2] sm:$0xff] %vm60_vm2, %v55_v30  ;;  %v68_v34 = vmul.f32 %v55_v30, %v55_v30  ;;  %v122_v41 = vsub.f32 %v55_v30, %v52_v23  ;;  %vm131_vm3 = vweird.f32 %v125_v31 }
  0x1c   :  { %273 = vrcp.f32 %v160_v33  ;;  %63 = vrot.lane.b32.xlu2 %v59_v32, %s363_s0  ;;  %v92_v39 = vmul.f32 %v59_v32, %v59_v32  ;;  %v135_v42 = vand.u32 2147483647, %v125_v31  ;;  %v137_v45 = vand.u32 2147483648, %v125_v31 }
  0x1d   :  { %275 = vlog2.f32 %v39_v22  ;;  %v432_v35 = vmul.f32 0.5, %v68_v34  ;;  %v71_v36 = vmul.f32 81377.4, %v68_v34  ;;  %vm166_vm4 = vweird.f32 %v160_v33 }
  0x1e   :  { %277 = vlog2.f32 %v51_v26  ;;  %v437_v47 = vmul.f32 0.5, %v92_v39  ;;  %v172_v50 = vand.u32 2147483648, %v160_v33  ;;  %v95_v51 = vmul.f32 81377.4, %v92_v39 }
  0x1f   :  { %v70_v37 = vsub.f32 -0.9189385, %v432_v35  ;;  %v72_v38 = vsub.f32 5.0810614, %v71_v36  ;;  %v170_v56 = vand.u32 2147483647, %v160_v33  ;;  %v157_v60 = vsub.f32 %v59_v32, %v56_v27 }
  0x20   :  { %v94_v54 = vsub.f32 -0.9189385, %v437_v47  ;;  %v96_v57 = vsub.f32 5.0810614, %v95_v51  ;;  %v138_v63 = vor.u32 1.1754944e-38, %v137_v45  ;;  %v123_v2 = vmul.f32 %v122_v41, %v122_v41 }
  0x21   :  { %v272_v40 = vpop.eup %271  ;;  %v73_v46 = vsub.f32 %v72_v38, %v70_v37  ;;  %vm136_vm8 = vcmp.eq.f32.partialorder %v135_v42, 8.507059e+37  ;;  %v173_v4 = vor.u32 1.1754944e-38, %v172_v50  ;;  %vm171_vm10 = vcmp.eq.f32.partialorder %v170_v56, 8.507059e+37 }
  0x22   :  { %v274_v43 = vpop.eup %273  ;;  %v127_v44 = vmul.f32 %v272_v40, %v125_v31  ;;  %vm132_vm5 = vweird.f32 %v272_v40  ;;  %v97_v1 = vsub.f32 %v96_v57, %v94_v54  ;;  %v158_v10 = vmul.f32 %v157_v60, %v157_v60 }
  0x23   :  { %v276_v48 = vpop.eup %275  ;;  %v162_v49 = vmul.f32 %v274_v43, %v160_v33  ;;  %v74_v53 = vmul.f32 1.442695, %v73_v46  ;;  %vm167_vm6 = vweird.f32 %v274_v43  ;;  %vm441_vm7 = vmor %vm131_vm3, %vm132_vm5 }
  0x24   :  { %v128_v52 = vsub.f32 1.0, %v127_v44  ;;  %v120_v58 = vmul.f32 0.6931472, %v276_v48  ;;  %v278_v61 = vpop.eup %277  ;;  %vm168_vm9 = vmor %vm166_vm4, %vm167_vm6  ;;  %v98_v6 = vmul.f32 1.442695, %v97_v1 }
  0x25   :  { %v163_v55 = vsub.f32 1.0, %v162_v49  ;;  %279 = vpow2.f32 %v74_v53  ;;  %v155_v9 = vmul.f32 0.6931472, %v278_v61 }
  0x26   :  { %v129_v59 = vmul.f32 %v272_v40, %v128_v52  ;;  %v121_v7 = vsub.f32 -0.9189385, %v120_v58  ;;  %281 = vpow2.f32 %v98_v6 }
  0x27   :  { %v164_v0 = vmul.f32 %v274_v43, %v163_v55  ;;  %v156_v18 = vsub.f32 -0.9189385, %v155_v9 }
  0x28   :  { %v130_v3 = vadd.f32 %v272_v40, %v129_v59 }
  0x29   :  { %v165_v5 = vadd.f32 %v274_v43, %v164_v0 }
  0x2a   :  { %v134_v8 = vsel %vm441_vm7, %v272_v40, %v130_v3 }
  0x2b   :  { %v139_v11 = vsel %vm136_vm8, %v138_v63, %v134_v8  ;;  %v169_v12 = vsel %vm168_vm9, %v274_v43, %v165_v5  ;;  %v280_v13 = vpop.eup %279  ;;  %v364_v63 = vmov 0.0  }
  0x2c   :  { %v140_v14 = vmul.f32 %v139_v11, %v123_v2  ;;  %v174_v15 = vsel %vm171_vm10, %v173_v4, %v169_v12  ;;  %v76_v16 = vmul.f32 0.5, %v280_v13  ;;  %v282_v22 = vpop.eup %281  ;;  %194 = vst.msk [vmem:[#allocation4] sm:$0x1] %vm193_vm12, %v364_v63 }
  0x2d   :  { %v175_v19 = vmul.f32 %v174_v15, %v158_v10  ;;  %v100_v24 = vmul.f32 0.5, %v282_v22  ;;  %195 = vst.msk [vmem:[#allocation6] sm:$0x1] %vm193_vm12, %v364_v63 }
  0x2e   :  { %v141_v17 = vsub.f32 %v121_v7, %v140_v14  ;;  %v77_v20 = vadd.f32 0.5, %v76_v16 }
  0x2f   :  { %v176_v23 = vsub.f32 %v156_v18, %v175_v19  ;;  %v101_v25 = vadd.f32 0.5, %v100_v24 }
  0x30   :  { %v142_v21 = vsel %vm60_vm2, %v141_v17, 0.0  ;;  %283 = vlog2.f32 %v77_v20 }
  0x31   :  { %143 = vadd.xlane.f32.xlu1 %v142_v21  ;;  %v177_v26 = vsel %vm105_vm11, %v176_v23, 0.0  ;;  %285 = vlog2.f32 %v101_v25 }
  0x33   :  { %v196_v3 = vld [vmem:[#allocation4] sm:$0x1] }
  0x34   :  { %v200_v7 = vld [vmem:[#allocation6] sm:$0x1] }
  0x36   :  { %v284_v27 = vpop.eup %283 }
  0x37   :  { %v79_v28 = vmul.f32 0.6931472, %v284_v27  ;;  %v286_v30 = vpop.eup %285 }
  0x38   :  { %v103_v32 = vmul.f32 0.6931472, %v286_v30 }
  0x39   :  { %178 = vadd.xlane.f32.xlu1 %v177_v26  ;;  %v80_v29 = vadd.f32 %v79_v28, %v70_v37 }
  0x3a   :  { %v104_v33 = vadd.f32 %v103_v32, %v94_v54 }
  0x3b   :  { %v81_v31 = vsel %vm60_vm2, %v80_v29, 0.0 }
  0x3c   :  { %82 = vadd.xlane.f32.xlu0 %v81_v31  ;;  %v106_v34 = vsel %vm105_vm11, %v104_v33, 0.0 }
  0x44   :  { %107 = vadd.xlane.f32.xlu0 %v106_v34 }
  0x76   :  { %v64_v0 = vpop.permute.xlu2 %63 }
  0x77   :  { %67 = vst.msk [vmem:[#allocation2] sm:$0xff] %vm66_vm13, %v64_v0 }
  0x78   :  { %213 = dma.vmem_to_hbm [thread:$0]  %s209_s3, 128, %s211_s16, [#allocation3]  }
  0xa4   :  { %v144_v36 = vpop.xlane.xlu1 %143 }
  0xa5   :  { %v145_v39 = vrot.slane %v144_v36, 4 }
  0xa7   :  { %v146_v44 = vadd.f32 %v145_v39, %v144_v36 }
  0xa9   :  { %v147_v37 = vrot.slane %v146_v44, 2 }
  0xab   :  { %v148_v53 = vadd.f32 %v147_v37, %v146_v44 }
  0xac   :  { %v179_v38 = vpop.xlane.xlu1 %178 }
  0xad   :  { %v180_v42 = vrot.slane %v179_v38, 4  ;;  %v149_v57 = vrot.slane %v148_v53, 1 }
  0xaf   :  { %v83_v40 = vpop.xlane.xlu0 %82  ;;  %v181_v46 = vadd.f32 %v180_v42, %v179_v38  ;;  %v150_v61 = vadd.f32 %v149_v57, %v148_v53 }
  0xb0   :  { %v84_v41 = vrot.slane %v83_v40, 4 }
  0xb1   :  { %v182_v48 = vrot.slane %v181_v46, 2 }
  0xb2   :  { %v85_v43 = vadd.f32 %v84_v41, %v83_v40 }
  0xb3   :  { %v183_v54 = vadd.f32 %v182_v48, %v181_v46 }
  0xb4   :  { %v86_v45 = vrot.slane %v85_v43, 2 }
  0xb5   :  { %v184_v59 = vrot.slane %v183_v54, 1 }
  0xb6   :  { %v87_v35 = vadd.f32 %v86_v45, %v85_v43 }
  0xb7   :  { %v108_v47 = vpop.xlane.xlu0 %107  ;;  %v185_v62 = vadd.f32 %v184_v59, %v183_v54 }
  0xb8   :  { %v109_v49 = vrot.slane %v108_v47, 4  ;;  %v88_v50 = vrot.slane %v87_v35, 1 }
  0xba   :  { %v110_v51 = vadd.f32 %v109_v49, %v108_v47  ;;  %v89_v52 = vadd.f32 %v88_v50, %v87_v35 }
  0xbc   :  { %v111_v55 = vrot.slane %v110_v51, 2  ;;  %250 = vpush %v89_v52 }
  0xbe   :  { %v112_v56 = vadd.f32 %v111_v55, %v110_v51 }
  0xc0   :  { %v113_v58 = vrot.slane %v112_v56, 1 }
  0xc2   :  { %v114_v60 = vadd.f32 %v113_v58, %v112_v56 }
  0xc4   :  { %252 = vpush %v114_v60 }
  0xc5   :  { %254 = vpush %v150_v61 }
  0xc6   :  { %256 = vpush %v185_v62 }
  0xed   :  { %s251_s17 = spop %250 }
  0xee   :  { %v91_v1 = vstv %s251_s17 }
  0xf5   :  { %s253_s20 = spop %252 }
  0xf6   :  { %v116_v2 = vstv %s253_s20  ;;  %s255_s21 = spop %254 }
  0xf7   :  { %v117_v4 = vadd.f32 %v116_v2, %v91_v1  ;;  %v152_v5 = vstv %s255_s21  ;;  %s257_s6 = spop %256 }
  0xf8   :  { %v187_v6 = vstv %s257_s6 }
  0xf9   :  { %v197_v8 = vadd.f32 %v196_v3, %v117_v4  ;;  %v188_v9 = vadd.f32 %v187_v6, %v152_v5 }
  0xfb   :  { %199 = vst.msk [vmem:[#allocation4] sm:$0x1] %vm193_vm12, %v197_v8  ;;  %v201_v10 = vadd.f32 %v200_v7, %v188_v9 }
  0xfc   :  { %224 = dma.vmem_to_hbm [thread:$0]  %s220_s19, 16, %s222_s24, [#allocation5]  }
  0xfd   :  { %202 = vst.msk [vmem:[#allocation6] sm:$0x1] %vm193_vm12, %v201_v10 }
  0xfe   :  { %235 = dma.vmem_to_hbm [thread:$0]  %s231_s26, 16, %s233_s29, [#allocation5]  }
  0xff   :  { %359 = dma.done.wait [#allocation3], 128  }
 0x100   :  { %360 = vsyncadd [#allocation3], 4294967168 }
 0x101   :  { %361 = dma.done.wait [#allocation5], 32  }
 0x102   :  { %362 = vsyncadd [#allocation5], 4294967264 }
 0x103   :  { %248 = vsyncpa [#allocation3], 1 }
 0x104   :  { %249 = vsyncpa [#allocation5], 1 }

</bundles_post_ra>
